<compile_context>
chip_gen: v6e
topology: v6e:2x2x1
jax: 0.10.0
libtpu: 0.0.40
codegen_flags: <defaults>
</compile_context>

<pallas_src>
import jax
import jax.numpy as jnp
from jax.experimental import pallas as pl
from jax.experimental.pallas import tpu as pltpu

KERNEL_SIZES = (3, 5, 7)
BN_EPS = 1e-5
N_TAPS = 8                         # 7 real taps (k_max) zero-padded to 8
PAD = max(KERNEL_SIZES) // 2       # 3
LANE = 128
VMEM_BUDGET = 20 * 1024 * 1024          # conservative per-step budget (v7x-safe)
RESIDENT_ROW_BUDGET = 8 * 1024 * 1024   # max bytes to keep a padded row in VMEM


def _round_up(a, b):
    return ((a + b - 1) // b) * b


# --------------------------------------------------------------------------- #
# Parameter folding
# --------------------------------------------------------------------------- #
def _fold_params(weights, biases, bn_gamma, bn_beta, bn_mean, bn_var,
                 kernel_sizes):
    """Fold inference-mode BN + conv bias, fuse branches, pad taps to N_TAPS."""
    C_out, C_in, _ = weights[0].shape
    C_tot = len(kernel_sizes) * C_out

    w_fused = jnp.zeros((C_tot, N_TAPS, C_in), jnp.float32)
    shifts = []
    for bi, (w, b, g, beta, m, v) in enumerate(
            zip(weights, biases, bn_gamma, bn_beta, bn_mean, bn_var)):
        k = kernel_sizes[bi]
        s = g / jnp.sqrt(v + BN_EPS)                          # (C_out,)
        w_s = (w * s[:, None, None]).astype(jnp.float32)      # (C_out, C_in, k)
        t0 = PAD - k // 2                                     # centre the taps
        w_fused = w_fused.at[bi * C_out:(bi + 1) * C_out, t0:t0 + k, :].set(
            jnp.transpose(w_s, (0, 2, 1)))                    # zero-padded taps
        shifts.append(b * s + beta - m * s)
    w_fused = w_fused.reshape(C_tot, N_TAPS * C_in).astype(jnp.bfloat16)
    shift = jnp.concatenate(shifts).reshape(C_tot, 1).astype(jnp.float32)
    return w_fused, shift


# --------------------------------------------------------------------------- #
# Kernels
# --------------------------------------------------------------------------- #
def _emit_compute(xwin, w_ref, shift_ref, o_ref, im2col_ref, TL, C_in):
    """xwin: (C_in, >= TL + N_TAPS - 1) bf16 halo window for this tile."""
    # Build im2col in a persistent VMEM scratch: row block t holds x[:, l + t].
    for t in range(N_TAPS):
        im2col_ref[t * C_in:(t + 1) * C_in, :] = xwin[:, t:t + TL]
    acc = jnp.dot(w_ref[...], im2col_ref[...],
                  preferred_element_type=jnp.float32)         # (C_tot, TL) f32
    o_ref[...] = jnp.maximum(acc + shift_ref[...], 0.0).astype(o_ref.dtype)


def _make_resident_kernel(TL, C_in):
    """x row for the current batch element is resident in VMEM (auto-pipelined)."""
    lw = TL + N_TAPS                      # halo slice width (row padded for it)

    def kernel(x_ref, w_ref, shift_ref, o_ref, im2col_ref):
        j = pl.program_id(1)
        start = pl.multiple_of(j * TL, LANE)
        xwin = x_ref[:, pl.ds(start, lw)]                 # (C_in, TL + 8)
        _emit_compute(xwin, w_ref, shift_ref, o_ref, im2col_ref, TL, C_in)
    return kernel


def _make_manual_kernel(TL, C_in):
    """Huge-row fallback: lane-aligned halo window DMA'd from HBM per tile."""
    lw_dma = TL + LANE                    # lane-aligned window -> aligned DMA

    def kernel(x_hbm, w_ref, shift_ref, o_ref, xbuf, im2col_ref, sem):
        n = pl.program_id(0)
        j = pl.program_id(1)
        start = pl.multiple_of(j * TL, LANE)
        # TODO(synk): double-buffer this copy across grid steps to overlap the
        # halo DMA with the matmul (kept synchronous for simplicity here).
        cp = pltpu.make_async_copy(x_hbm.at[n, :, pl.ds(start, lw_dma)],
                                   xbuf, sem.at[0])
        cp.start()
        cp.wait()
        _emit_compute(xbuf[...], w_ref, shift_ref, o_ref, im2col_ref, TL, C_in)
    return kernel


# --------------------------------------------------------------------------- #
# Wrapper
# --------------------------------------------------------------------------- #
def multi_scale_conv1d(x_ncl, weights, biases, bn_gamma, bn_beta, bn_mean,
                       bn_var, kernel_sizes=KERNEL_SIZES, *,
                       force_manual_dma=False):
    """Forward pass of MultiScaleConv1d with BatchNorm in eval() mode.

    x_ncl: (N, C_in, L) float32 (PyTorch NCL layout).
    Returns (N, len(kernel_sizes) * C_out, L) float32.
    """
    N, C_in, L = x_ncl.shape
    C_out = weights[0].shape[0]
    C_tot = len(kernel_sizes) * C_out

    w_fused, shift = _fold_params(weights, biases, bn_gamma, bn_beta, bn_mean,
                                  bn_var, kernel_sizes)

    # ---- tiling (VMEM-budget aware, lane-dense) ---------------------------- #
    Lp = _round_up(L, LANE)               # pad L -> unmasked wide stores
    x_bytes, out_bytes = 2, 4             # bf16 inputs/weights, f32 outputs

    row_resident_bytes = 2 * C_in * (Lp + N_TAPS) * x_bytes
    use_manual = force_manual_dma or row_resident_bytes > RESIDENT_ROW_BUDGET

    def fits(tl, resident):
        if resident:
            x_vmem = 2 * C_in * (Lp + N_TAPS) * x_bytes       # row, dbl-buffered
        else:
            x_vmem = C_in * (tl + LANE) * x_bytes             # manual halo buf
        vm = (x_vmem
              + C_tot * N_TAPS * C_in * x_bytes               # weights (1 buf)
              + C_tot * out_bytes                             # shift
              + 2 * C_tot * tl * out_bytes                    # output, 2 bufs
              + N_TAPS * C_in * tl * x_bytes                  # im2col scratch
              + C_in * (tl + LANE) * out_bytes                # window in regs
              + C_tot * tl * out_bytes)                       # f32 acc in regs
        return vm <= VMEM_BUDGET

    TL = None
    for cand in (1024, 512, 256, 128):
        if Lp % cand == 0 and fits(cand, not use_manual):
            TL = cand
            break
    if TL is None:
        TL = LANE                          # minimum legal lane-dense tile
    num_l_tiles = Lp // TL
    if N * num_l_tiles == 1 and TL >= 2 * LANE:
        TL //= 2                           # expose >=2 parallel units (v7x 2 TCs)
        num_l_tiles = Lp // TL

    halo_cols = LANE if use_manual else N_TAPS
    row_len = Lp + halo_cols
    # Only wrapper-side data movement: zero-pad the lane axis (no gathers, no
    # transposes) and cast activations to bf16.
    x_pad = jnp.pad(x_ncl.astype(jnp.bfloat16),
                    ((0, 0), (0, 0), (PAD, row_len - PAD - L)))

    # ---- specs -------------------------------------------------------------- #
    w_spec = pl.BlockSpec((C_tot, N_TAPS * C_in), lambda n, j: (0, 0),
                          pipeline_mode=pl.Buffered(1))       # resident weights
    s_spec = pl.BlockSpec((C_tot, 1), lambda n, j: (0, 0),
                          pipeline_mode=pl.Buffered(1))       # resident shift
    out_spec = pl.BlockSpec((None, C_tot, TL), lambda n, j: (n, 0, j))

    if use_manual:
        kernel = _make_manual_kernel(TL, C_in)
        x_spec = pl.BlockSpec(memory_space=pl.ANY)            # raw HBM ref
        scratch = [pltpu.VMEM((C_in, TL + LANE), jnp.bfloat16),
                   pltpu.VMEM((N_TAPS * C_in, TL), jnp.bfloat16),
                   pltpu.SemaphoreType.DMA((1,))]
    else:
        kernel = _make_resident_kernel(TL, C_in)
        # Whole padded row per batch element; block index depends only on n,
        # so it is DMA'd exactly once per row (one HBM pass, no halo gather).
        x_spec = pl.BlockSpec((None, C_in, row_len), lambda n, j: (n, 0, 0))
        scratch = [pltpu.VMEM((N_TAPS * C_in, TL), jnp.bfloat16)]

    cost = pl.CostEstimate(
        flops=2 * N * Lp * C_tot * N_TAPS * C_in,
        transcendentals=0,
        bytes_accessed=(int(x_pad.size) * x_bytes
                        + int(w_fused.size) * x_bytes
                        + int(shift.size) * out_bytes
                        + N * C_tot * Lp * out_bytes))

    out = pl.pallas_call(
        kernel,
        out_shape=jax.ShapeDtypeStruct((N, C_tot, Lp), x_ncl.dtype),
        grid_spec=pltpu.PrefetchScalarGridSpec(
            num_scalar_prefetch=0,
            grid=(N, num_l_tiles),
            in_specs=[x_spec, w_spec, s_spec],
            out_specs=out_spec,
            scratch_shapes=scratch),
        compiler_params=pltpu.CompilerParams(
            dimension_semantics=("parallel", "parallel")),
        cost_estimate=cost,
    )(x_pad, w_fused, shift)

    return out if Lp == L else out[:, :, :L]


# --------------------------------------------------------------------------- #
# Pure-JAX reference (inference-mode BN) and tests
# --------------------------------------------------------------------------- #
def reference(x_ncl, weights, biases, bn_gamma, bn_beta, bn_mean, bn_var):
    outs = []
    for w, b, g, bt, m, v in zip(weights, biases, bn_gamma, bn_beta, bn_mean,
                                 bn_var):
        k = w.shape[-1]
        y = jax.lax.conv_general_dilated(
            x_ncl, w, window_strides=(1,), padding=[(k // 2, k // 2)],
            dimension_numbers=("NCH", "OIH", "NCH"))
        y = y + b[None, :, None]
        y = (y - m[None, :, None]) / jnp.sqrt(v + BN_EPS)[None, :, None]
        y = y * g[None, :, None] + bt[None, :, None]
        outs.append(jnp.maximum(y, 0.0))
    return jnp.concatenate(outs, axis=1)


def _make_params(key, C_in, C_out):
    keys = jax.random.split(key, 6 * len(KERNEL_SIZES))
    ws, bs, gs, bts, ms, vs = [], [], [], [], [], []
    ki = 0
    for k in KERNEL_SIZES:
        ws.append(0.1 * jax.random.normal(keys[ki], (C_out, C_in, k),
                                          jnp.float32)); ki += 1
        bs.append(0.05 * jax.random.normal(keys[ki], (C_out,),
                                           jnp.float32)); ki += 1
        gs.append(1.0 + 0.1 * jax.random.normal(keys[ki], (C_out,),
                                                jnp.float32)); ki += 1
        bts.append(0.05 * jax.random.normal(keys[ki], (C_out,),
                                            jnp.float32)); ki += 1
        ms.append(0.1 * jax.random.normal(keys[ki], (C_out,),
                                          jnp.float32)); ki += 1
        vs.append(0.5 + 0.5 * jnp.abs(jax.random.normal(keys[ki], (C_out,),
                                                        jnp.float32))); ki += 1
    return ws, bs, gs, bts, ms, vs


if __name__ == "__main__":
    key = jax.random.PRNGKey(0)
    TOL = dict(atol=5e-2, rtol=5e-2)   # bf16 inputs/weights, f32 accumulation

    # Test 1: small shapes consistent with the module (single L tile).
    kx, kp, key = jax.random.split(key, 3)
    N, C_in, L, C_out = 2, 4, 16, 8
    x = jax.random.normal(kx, (N, C_in, L), jnp.float32)
    params = _make_params(kp, C_in, C_out)
    out = jax.block_until_ready(multi_scale_conv1d(x, *params))
    ref = reference(x, *params)
    assert out.shape == (N, len(KERNEL_SIZES) * C_out, L), out.shape
    assert jnp.allclose(out, ref, **TOL), float(jnp.max(jnp.abs(out - ref)))

    # Test 2: multi-tile, non-128-multiple L (pads to 384 -> 3 lane-dense tiles).
    kx, kp, key = jax.random.split(key, 3)
    N2, C_in2, L2, C_out2 = 1, 8, 300, 8
    x2 = jax.random.normal(kx, (N2, C_in2, L2), jnp.float32)
    params2 = _make_params(kp, C_in2, C_out2)
    out2 = jax.block_until_ready(multi_scale_conv1d(x2, *params2))
    ref2 = reference(x2, *params2)
    assert out2.shape == (N2, len(KERNEL_SIZES) * C_out2, L2), out2.shape
    assert jnp.allclose(out2, ref2, **TOL), float(jnp.max(jnp.abs(out2 - ref2)))

    # Test 3: exercise the manual-DMA halo path (huge-row fallback) explicitly.
    out3 = jax.block_until_ready(
        multi_scale_conv1d(x2, *params2, force_manual_dma=True))
    assert jnp.allclose(out3, ref2, **TOL), float(jnp.max(jnp.abs(out3 - ref2)))

    print("KERNEL_OK")
</pallas_src>

<mosaic_0001>
module attributes {stable_mosaic.version = 11 : i64} {
  func.func @kernel(%arg0: i32, %arg1: i32, %arg2: memref<1x4x136xbf16, #tpu.memory_space<vmem>>, %arg3: memref<24x32xbf16, #tpu.memory_space<vmem>>, %arg4: memref<24x1xf32, #tpu.memory_space<vmem>>, %arg5: memref<1x24x128xf32, #tpu.memory_space<vmem>>, %arg6: memref<32x128xbf16, #tpu.memory_space<vmem>>) attributes {dimension_semantics = [#tpu.dimension_semantics<parallel>, #tpu.dimension_semantics<parallel>], iteration_bounds = array<i64: 2, 1>, scalar_prefetch = 0 : i64, scratch_operands = 1 : i64, tpu.core_type = #tpu.core_type<tc>, window_params = [{transform_indices = @transform_0, window_bounds = array<i64: 1, 4, 136>}, {pipeline_mode = #tpu.pipeline_mode<synchronous>, transform_indices = @transform_1, window_bounds = array<i64: 24, 32>}, {pipeline_mode = #tpu.pipeline_mode<synchronous>, transform_indices = @transform_2, window_bounds = array<i64: 24, 1>}, {transform_indices = @transform_3, window_bounds = array<i64: 1, 24, 128>}]} {
    %c128_i32 = arith.constant 128 : i32
    %0 = arith.muli %arg1, %c128_i32 : i32
    %1 = tpu.assume_multiple %0, 128 : i32
    %c0 = arith.constant 0 : index
    %c0_0 = arith.constant 0 : index
    %2 = arith.index_cast %1 : i32 to index
    %3 = vector.load %arg2[%c0, %c0_0, %2] : memref<1x4x136xbf16, #tpu.memory_space<vmem>>, vector<1x4x136xbf16>
    %4 = vector.shape_cast %3 : vector<1x4x136xbf16> to vector<4x136xbf16>
    %5 = vector.extract_strided_slice %4 {offsets = [0, 0], sizes = [4, 128], strides = [1, 1]} : vector<4x136xbf16> to vector<4x128xbf16>
    %c0_1 = arith.constant 0 : index
    %c0_2 = arith.constant 0 : index
    %6 = vector.load %arg6[%c0_1, %c0_2] : memref<32x128xbf16, #tpu.memory_space<vmem>>, vector<4x128xbf16>
    tpu.vector_store %arg6[%c0_1, %c0_2], %5 {strides = array<i32>} : memref<32x128xbf16, #tpu.memory_space<vmem>>, vector<4x128xbf16>,
    %7 = vector.extract_strided_slice %4 {offsets = [0, 1], sizes = [4, 128], strides = [1, 1]} : vector<4x136xbf16> to vector<4x128xbf16>
    %c4 = arith.constant 4 : index
    %c0_3 = arith.constant 0 : index
    %8 = vector.load %arg6[%c4, %c0_3] : memref<32x128xbf16, #tpu.memory_space<vmem>>, vector<4x128xbf16>
    tpu.vector_store %arg6[%c4, %c0_3], %7 {strides = array<i32>} : memref<32x128xbf16, #tpu.memory_space<vmem>>, vector<4x128xbf16>,
    %9 = vector.extract_strided_slice %4 {offsets = [0, 2], sizes = [4, 128], strides = [1, 1]} : vector<4x136xbf16> to vector<4x128xbf16>
    %c8 = arith.constant 8 : index
    %c0_4 = arith.constant 0 : index
    %10 = vector.load %arg6[%c8, %c0_4] : memref<32x128xbf16, #tpu.memory_space<vmem>>, vector<4x128xbf16>
    tpu.vector_store %arg6[%c8, %c0_4], %9 {strides = array<i32>} : memref<32x128xbf16, #tpu.memory_space<vmem>>, vector<4x128xbf16>,
    %11 = vector.extract_strided_slice %4 {offsets = [0, 3], sizes = [4, 128], strides = [1, 1]} : vector<4x136xbf16> to vector<4x128xbf16>
    %c12 = arith.constant 12 : index
    %c0_5 = arith.constant 0 : index
    %12 = vector.load %arg6[%c12, %c0_5] : memref<32x128xbf16, #tpu.memory_space<vmem>>, vector<4x128xbf16>
    tpu.vector_store %arg6[%c12, %c0_5], %11 {strides = array<i32>} : memref<32x128xbf16, #tpu.memory_space<vmem>>, vector<4x128xbf16>,
    %13 = vector.extract_strided_slice %4 {offsets = [0, 4], sizes = [4, 128], strides = [1, 1]} : vector<4x136xbf16> to vector<4x128xbf16>
    %c16 = arith.constant 16 : index
    %c0_6 = arith.constant 0 : index
    %14 = vector.load %arg6[%c16, %c0_6] : memref<32x128xbf16, #tpu.memory_space<vmem>>, vector<4x128xbf16>
    tpu.vector_store %arg6[%c16, %c0_6], %13 {strides = array<i32>} : memref<32x128xbf16, #tpu.memory_space<vmem>>, vector<4x128xbf16>,
    %15 = vector.extract_strided_slice %4 {offsets = [0, 5], sizes = [4, 128], strides = [1, 1]} : vector<4x136xbf16> to vector<4x128xbf16>
    %c20 = arith.constant 20 : index
    %c0_7 = arith.constant 0 : index
    %16 = vector.load %arg6[%c20, %c0_7] : memref<32x128xbf16, #tpu.memory_space<vmem>>, vector<4x128xbf16>
    tpu.vector_store %arg6[%c20, %c0_7], %15 {strides = array<i32>} : memref<32x128xbf16, #tpu.memory_space<vmem>>, vector<4x128xbf16>,
    %17 = vector.extract_strided_slice %4 {offsets = [0, 6], sizes = [4, 128], strides = [1, 1]} : vector<4x136xbf16> to vector<4x128xbf16>
    %c24 = arith.constant 24 : index
    %c0_8 = arith.constant 0 : index
    %18 = vector.load %arg6[%c24, %c0_8] : memref<32x128xbf16, #tpu.memory_space<vmem>>, vector<4x128xbf16>
    tpu.vector_store %arg6[%c24, %c0_8], %17 {strides = array<i32>} : memref<32x128xbf16, #tpu.memory_space<vmem>>, vector<4x128xbf16>,
    %19 = vector.extract_strided_slice %4 {offsets = [0, 7], sizes = [4, 128], strides = [1, 1]} : vector<4x136xbf16> to vector<4x128xbf16>
    %c28 = arith.constant 28 : index
    %c0_9 = arith.constant 0 : index
    %20 = vector.load %arg6[%c28, %c0_9] : memref<32x128xbf16, #tpu.memory_space<vmem>>, vector<4x128xbf16>
    tpu.vector_store %arg6[%c28, %c0_9], %19 {strides = array<i32>} : memref<32x128xbf16, #tpu.memory_space<vmem>>, vector<4x128xbf16>,
    %c0_10 = arith.constant 0 : index
    %c0_11 = arith.constant 0 : index
    %21 = vector.load %arg3[%c0_10, %c0_11] : memref<24x32xbf16, #tpu.memory_space<vmem>>, vector<24x32xbf16>
    %c0_12 = arith.constant 0 : index
    %c0_13 = arith.constant 0 : index
    %22 = vector.load %arg6[%c0_12, %c0_13] : memref<32x128xbf16, #tpu.memory_space<vmem>>, vector<32x128xbf16>
    %cst = arith.constant dense<0.000000e+00> : vector<24x128xf32>
    %23 = tpu.matmul %21, %22, %cst {dimension_numbers = #tpu.dot_dimension_numbers<[1], [0], [0], [1], [0, 0, 1, 1], [], []>} : vector<24x32xbf16>, vector<32x128xbf16>, vector<24x128xf32> -> vector<24x128xf32>
    %c0_14 = arith.constant 0 : index
    %c0_15 = arith.constant 0 : index
    %24 = vector.load %arg4[%c0_14, %c0_15] : memref<24x1xf32, #tpu.memory_space<vmem>>, vector<24x1xf32>
    %25 = vector.broadcast %24 : vector<24x1xf32> to vector<24x128xf32>
    %26 = arith.addf %23, %25 : vector<24x128xf32>
    %cst_16 = arith.constant 0.000000e+00 : f32
    %27 = vector.broadcast %cst_16 : f32 to vector<24x128xf32>
    %28 = arith.maximumf %26, %27 : vector<24x128xf32>
    %c0_17 = arith.constant 0 : index
    %c0_18 = arith.constant 0 : index
    %c0_19 = arith.constant 0 : index
    %29 = vector.load %arg5[%c0_17, %c0_18, %c0_19] : memref<1x24x128xf32, #tpu.memory_space<vmem>>, vector<1x24x128xf32>
    %30 = vector.shape_cast %29 : vector<1x24x128xf32> to vector<24x128xf32>
    %31 = vector.shape_cast %28 : vector<24x128xf32> to vector<1x24x128xf32>
    tpu.vector_store %arg5[%c0_17, %c0_18, %c0_19], %31 {strides = array<i32>} : memref<1x24x128xf32, #tpu.memory_space<vmem>>, vector<1x24x128xf32>,
    return
  }
  func.func @transform_0(%arg0: i32, %arg1: i32) -> (i32, i32, i32) {
    %c0_i32 = arith.constant 0 : i32
    %c0_i32_0 = arith.constant 0 : i32
    %c0_i32_1 = arith.constant 0 : i32
    return %arg0, %c0_i32, %c0_i32_0 : i32, i32, i32
  }
  func.func @transform_1(%arg0: i32, %arg1: i32) -> (i32, i32) {
    %c0_i32 = arith.constant 0 : i32
    %c0_i32_0 = arith.constant 0 : i32
    %c0_i32_1 = arith.constant 0 : i32
    return %c0_i32, %c0_i32_0 : i32, i32
  }
  func.func @transform_2(%arg0: i32, %arg1: i32) -> (i32, i32) {
    %c0_i32 = arith.constant 0 : i32
    %c0_i32_0 = arith.constant 0 : i32
    %c0_i32_1 = arith.constant 0 : i32
    return %c0_i32, %c0_i32_0 : i32, i32
  }
  func.func @transform_3(%arg0: i32, %arg1: i32) -> (i32, i32, i32) {
    %c0_i32 = arith.constant 0 : i32
    %c0_i32_0 = arith.constant 0 : i32
    return %arg0, %c0_i32, %arg1 : i32, i32, i32
  }
}

</mosaic_0001>

<bundles_post_ra>
// kernel: tpu_custom_call.1
= control target key start
LH: loop header
LB: loop body
LE: loop exit
PB: predicated region body
PF: predicated region fallthrough
CT: control target
= control target key end

     0   :  { %8 = vsyncpa [#allocation4], 0  ;;  %s796_s0 = inlined_call_operand.vmem [shape: bf16[2,4,136], index: 0, kind: input, shape index: {}]   ;;  %s797_s1 = inlined_call_operand.vmem [shape: bf16[24,32], index: 1, kind: input, shape index: {}]   ;;  %s798_s2 = inlined_call_operand.vmem [shape: f32[24,1], index: 2, kind: input, shape index: {}]   ;;  %s799_s3 = inlined_call_operand.hbm [shape: f32[2,24,128], index: 3, kind: output, shape index: {}]  }
   0x1   :  { %10 = vsyncpa [#allocation4 + $0x1], 0  ;;  %s665_s12 = smov 0   ;;  %s667_s13 = smov 0  }
   0x2   :  { %s669_s14 = smov 0   ;;  %s671_s15 = smov 0  }
   0x3   :  { %s673_s16 = smov 0   ;;  %s675_s17 = smov 0  }
   0x4 LB: > { %s451_s18 = sadd.s32 4294967295, %s631_s17   ;;  %s452_s19 = sadd.s32 4294967294, %s631_s17   ;;  %s631_s17 = sphi %s675_s17, %s16_s17   ;;  %s627_s16 = sphi %s673_s16, %s806_s16   ;;  %s623_s15 = sphi %s671_s15, %s805_s15   ;;  %s619_s14 = sphi %s669_s14, %s804_s14   ;;  %s615_s13 = sphi %s667_s13, %s803_s13   ;;  %s611_s12 = sphi %s665_s12, %s802_s12  }
   0x5   : > { %s28_s20 = sadd.s32 1, %s627_s16  ;;  %s105_s21 = sadd.s32 1, %s619_s14 }
   0x6   : > { %p30_p0 = scmp.ge.s32.totalorder %s28_s20, 2  ;;  %p115_p1 = scmp.ne.s32.totalorder %s619_s14, %s615_s13 }
   0x7   : > { %p116_p2 = scmp.eq.s32.totalorder %s451_s18, 1  ;;  %p121_p3 = scmp.ne.s32.totalorder %s615_s13, %s611_s12 }
   0x8   : > { %s808_s20 = smov (%p30_p0, %s28_s20), 0  ;;  %p122_p5 = scmp.eq.s32.totalorder %s452_s19, 1 }
   0x9   : > { %p705_p4 = por %p116_p2, %p115_p1  ;;  %s100_s23 = ssub.s32 %s627_s16, %s808_s20 }
   0xa   : > { %p455_p6 = scmp.ge.s32.totalorder %s631_s17, 1  ;;  %p103_p7 = scmp.eq.s32.totalorder %s100_s23, 0 }
   0xb   : > { %p712_p8 = por %p122_p5, %p121_p3  ;;  %p154_p9 = scmp.lt.s32.totalorder %s631_s17, 3 }
   0xc   : > { %s718_s25 = scalar_select %p103_p7, %s619_s14, %s105_s21  }
   0xd   : > { %p155_p10 = pnand %p455_p6, %p154_p9 }
   0xe   : > { %p178_p11 = scmp.lt.s32.totalorder (!%p155_p10), %s623_s15, 1  ;;  %s634_s4 = smov (!%p155_p10), 122  }
   0xf   : > { %158 = sbr.rel (%p155_p10) target bundleno = 388 (0x184), region = 32  ;;  %s635_s5 = smov (!%p155_p10), 124  }
  0x10   : > { %s636_s6 = smov (!%p155_p10), 121   ;;  %s637_s7 = smov (!%p155_p10), 123  }
  0x11   : > { %s638_s8 = smov (!%p155_p10), 127   ;;  %s639_s9 = smov (!%p155_p10), 126  }
  0x12   : > { %s640_s10 = smov (!%p155_p10), 125   ;;  %s642_s19 = smov (!%p155_p10), [#allocation3]  }
  0x13   : > { %s559_s21 = sshll.u32 (!%p155_p10), %s642_s19, 4  ;;  %s560_s21 = int_to_ptr.vmem [resolvable:$false] %s559_s21 }
  0x14   : > { %v196_v0 = vlaneseq  ;;  %v633_v1 = vmov 1983009808   ;;  %s179_s26 = scalar_select %p178_p11, %s623_s15, 1  ;;  %v553_v10 = vld [vmem:[%s797_s1] sm:$0xff]   ;;  %vm301_vm0 = vcmask 261120   ;;  %v264_v12 = vld [vmem:[%s798_s2 + $0x8] sm:$0xff] }
  0x15   : > { %v194_v2 = vunpack.c.l.s4 %v633_v1  ;;  %476 = vmatprep.mubr.msk.bf16.mxu0 %vm301_vm0, %v553_v10  ;;  %v263_v11 = vld [vmem:[%s798_s2] sm:$0xff]  ;;  %v641_v13 = vmov 0   ;;  %v265_v14 = vld [vmem:[%s798_s2 + $0x10] sm:$0xff]  ;;  %vm245_vm1 = vcmask 998400   ;;  %vm231_vm2 = vcmask 1014784   ;;  %s561_s23 = scalar_lea.vmem %s560_s21, 768 }
  0x16   : > { %v197_v3 = vshrl.u32 %v196_v0, 7  ;;  %s467_s27 = sshll.u32 %s179_s26, 2  ;;  %548 = vset.pattern.permute.xlu1 %v641_v13  ;;  %549 = vset.pattern.permute.xlu0 %v641_v13  ;;  %vm252_vm3 = vcmask 990208   ;;  %vm238_vm4 = vcmask 1006592   ;;  %vm203_vm5 = vcmask 1039360  }
  0x17   : > { %v195_v4 = vunpack.c.0.s8 %v194_v2  ;;  %s182_s30 = scalar_lea.vmem %s796_s0, %s467_s27  ;;  %vm217_vm6 = vcmask 1031168   ;;  %vm224_vm7 = vcmask 1022976   ;;  %v554_v38 = vld [vmem:[%s797_s1 + $0x8] ss:$0 sps:$4 sm:$0xff]  }
  0x18   : > { %v189_v6 = vld [vmem:[%s182_s30] sm:$0xf] }
  0x19   : > { %v198_v5 = vsub.s32 %v195_v4, %v197_v3  ;;  %190 = vst [vmem:[#allocation2] sm:$0x3] %v189_v6  ;;  %v192_v8 = vcombine.low %v189_v6, %v189_v6 }
  0x1b   : > { %v213_v7 = vrot.slane %v189_v6, %v198_v5  ;;  %v199_v9 = vrot.slane %v192_v8, %v198_v5 }
  0x1d   : > { %242 = vrot.lane.b32.xlu1 %v213_v7, %s634_s4  ;;  %228 = vrot.lane.b32.xlu0 %v213_v7, %s635_s5  ;;  %s175_s4 = sand.u32 1, %s615_s13  }
  0x1e   : > { %s480_s5 = smul.u32 24, %s175_s4 }
  0x21   : > { %249 = vrot.lane.b32.xlu1 %v199_v9, %s636_s6  ;;  %235 = vrot.lane.b32.xlu0 %v199_v9, %s637_s7  ;;  %s481_s6 = smul.u32 384, %s623_s15  ;;  %s177_s7 = scalar_lea.vmem [#allocation3], %s480_s5 }
  0x22   : > { %s751_s15 = scalar_lea.sflag [#allocation4], %s175_s4 }
  0x23   : > { %s749_s11 = scalar_lea.hbm %s799_s3, %s481_s6 }
  0x25   : > { %200 = vrot.lane.b32.xlu0 %v199_v9, %s638_s8  ;;  %214 = vrot.lane.b32.xlu1 %v213_v7, %s639_s9  ;;  %s377_s8 = sshll.u32 %s177_s7, 4  ;;  %s744_s8 = int_to_ptr.vmem [resolvable:$true] %s377_s8 }
  0x26   : > { %s555_s18 = scalar_lea.vmem %s744_s8, 384  ;;  %p562_p1 = scmp.lt.s32.totalorder %s744_s8, %s560_s21 }
  0x27   : > { %p556_p12 = scmp.ne.s32.totalorder %s744_s8, %s555_s18  ;;  %p563_p2 = scmp.lt.s32.totalorder %s561_s23, %s555_s18 }
  0x29   : > { %221 = vrot.lane.b32.xlu0 %v199_v9, %s640_s10  ;;  %268 = vperm.xlu1 %548, %v263_v11   ;;  %p557_p13 = pnand %p556_p12, %p705_p4  ;;  %p564_p3 = por %p563_p2, %p562_p1 }
  0x2b   : > { %p558_p0 = pneg %p557_p13 }
  0x2d   : > { %273 = vperm.xlu0 %549, %v264_v12   ;;  %278 = vperm.xlu1 %548, %v265_v14   ;;  %p565_p5 = pnand %p564_p3, %p558_p0 }
  0x8f   : > { %v243_v15 = vpop.permute.xlu1 %242  ;;  %v229_v16 = vpop.permute.xlu0 %228 }
  0x90   : > { %v244_v17 = vrot.slane %v243_v15, 4  ;;  %v230_v18 = vrot.slane %v229_v16, 4 }
  0x92   : > { %v246_v19 = vsel %vm245_vm1, %v243_v15, %v244_v17  ;;  %v232_v20 = vsel %vm231_vm2, %v229_v16, %v230_v18 }
  0x93   : > { %248 = vst [vmem:[#allocation2 + $0xc] sm:$0x3] %v246_v19  ;;  %234 = vst [vmem:[#allocation2 + $0x8] sm:$0x3] %v232_v20  ;;  %v250_v21 = vpop.permute.xlu1 %249  ;;  %v236_v22 = vpop.permute.xlu0 %235 }
  0x94   : > { %v251_v23 = vrot.slane %v250_v21, 4  ;;  %v237_v24 = vrot.slane %v236_v22, 4 }
  0x96   : > { %v253_v25 = vsel %vm252_vm3, %v250_v21, %v251_v23  ;;  %v239_v26 = vsel %vm238_vm4, %v236_v22, %v237_v24 }
  0x97   : > { %255 = vst [vmem:[#allocation2 + $0xc] sm:$0xc] %v253_v25  ;;  %241 = vst [vmem:[#allocation2 + $0x8] sm:$0xc] %v239_v26  ;;  %v201_v27 = vpop.permute.xlu0 %200  ;;  %v215_v28 = vpop.permute.xlu1 %214 }
  0x98   : > { %v202_v29 = vrot.slane %v201_v27, 4  ;;  %v216_v30 = vrot.slane %v215_v28, 4 }
  0x9a   : > { %v204_v31 = vsel %vm203_vm5, %v201_v27, %v202_v29  ;;  %v218_v32 = vsel %vm217_vm6, %v215_v28, %v216_v30 }
  0x9b   : > { %206 = vst [vmem:[#allocation2] sm:$0xc] %v204_v31  ;;  %220 = vst [vmem:[#allocation2 + $0x4] sm:$0x3] %v218_v32  ;;  %v222_v33 = vpop.permute.xlu0 %221 }
  0x9c   : > { %v223_v34 = vrot.slane %v222_v33, 4 }
  0x9e   : > { %v225_v35 = vsel %vm224_vm7, %v222_v33, %v223_v34  ;;  %v551_v36 = vld [vmem:[#allocation2 + $0x8] sm:$0xff]  }
  0x9f   : > { %227 = vst [vmem:[#allocation2 + $0x4] sm:$0xc] %v225_v35  ;;  %472 = vmatprep.subr.bf16.mxu0 %v551_v36 }
  0xa0   : > { %473 = vmatpush3.bf16.msra.mxu0 %v551_v36 }
  0xa4   : > { %v269_v39 = vpop.permute.xlu1 %268 }
  0xa6   : > { %v552_v37 = vld [vmem:[#allocation2] sm:$0xff]  }
  0xa7   : > { %474 = vmatprep.subr.bf16.mxu0 %v552_v37 }
  0xa8   : > { %475 = vmatpush3.bf16.msra.mxu0 %v552_v37  ;;  %v279_v40 = vpop.permute.xlu1 %278  ;;  %v274_v47 = vpop.permute.xlu0 %273 }
  0xab   : > { %477 = vmatmul.mubr.msk.bf16.vlgmr.msra.gmra.mxu0 %vm301_vm0, %v554_v38 }
 0x16b   : > { %v478_v41 = vpop.f32.mrf.mxu0 }
 0x16c   : > { %v351_v42 = vadd.f32 %v478_v41, %v279_v40 }
 0x16d   : > { %v342_v43 = vpop.f32.mrf.mxu0 }
 0x16e   : > { %v358_v44 = vmax.f32 %v351_v42, 0.0  ;;  %v343_v45 = vadd.f32 %v342_v43, %v269_v39 }
 0x16f   : > { %v479_v46 = vpop.f32.mrf.mxu0 }
 0x170   : > { %361 = vst [vmem:[%s177_s7 + $0x10] sm:$0xff] %v358_v44  ;;  %v356_v48 = vmax.f32 %v343_v45, 0.0 }
 0x171   : > { %v345_v49 = vpop.f32.mrf.mxu0 }
 0x172   : > { %359 = vst [vmem:[%s177_s7] sm:$0xff] %v356_v48  ;;  %v346_v50 = vadd.f32 %v345_v49, %v274_v47 }
 0x174   : > { %v357_v51 = vmax.f32 %v346_v50, 0.0 }
 0x176   : > { %360 = vst [vmem:[%s177_s7 + $0x8] sm:$0xff] %v357_v51 }
 0x177   : > { %568 = shalt.err (!%p565_p5)
}
 0x178   : > { %s569_s26 = scalar_lea.hbm %s749_s11, 384  ;;  %s573_s29 = scalar_lea.hbm %s799_s3, 768 }
 0x179   : > { %p570_p6 = scmp.ne.s32.totalorder %s749_s11, %s569_s26  ;;  %p574_p10 = scmp.lt.s32.totalorder %s749_s11, %s799_s3 }
 0x17a   : > { %p575_p11 = scmp.lt.s32.totalorder %s573_s29, %s569_s26 }
 0x17b   : > { %p571_p7 = pnand %p570_p6, %p705_p4 }
 0x17c   : > { %p576_p12 = por %p575_p11, %p574_p10 }
 0x17d   : > { %p572_p9 = pneg %p571_p7 }
 0x17f   : > { %p577_p13 = pnand %p576_p12, %p572_p9 }
 0x181   : > { %580 = shalt.err (!%p577_p13)
}
 0x182   : > { %s643_s5 = smov 128   ;;  %s644_s6 = smov 8  }
 0x183   : > { %482 = dma.vmem_to_hbm [thread:$0]  (%p705_p4), %s744_s8, 384, %s749_s11, %s751_s15, %s643_s5, %s643_s5, %s644_s6  }
 0x184 PF: > { %p488_p0 = scmp.ge.s32.totalorder %s631_s17, 2  ;;  %s392_s7 = sand.u32 1, %s611_s12  }
 0x185   : > { %s393_s9 = scalar_lea.sflag [#allocation4], %s392_s7 }
 0x186   : > { %p485_p1 = pnand %p488_p0, %p712_p8 }
 0x188   : > { %p486_p2 = pneg %p485_p1 }
 0x18a   : > { %606 = dma.done.wait (%p486_p2), %s393_s9, 384  }
 0x18b   : > { %608 = vsyncadd (%p486_p2), %s393_s9, 4294966912  ;;  %s16_s17 = sadd.s32 1, %s631_s17   ;;  %s802_s12 = smov %s615_s13 }
 0x18c   : > { %p13_p3 = scmp.ge.s32.totalorder %s16_s17, 4   ;;  %s803_s13 = smov %s619_s14 }
 0x18d   : > { %s804_s14 = smov %s718_s25  ;;  %s805_s15 = smov %s627_s16 }
 0x18e   : > { %s806_s16 = smov %s808_s20  ;;  %15 = sbr.rel (!%p13_p3) target bundleno = 4 (0x4), region = 68 }
 0x193   :  { %398 = vsyncpa [#allocation4], 1 }
 0x194   :  { %400 = vsyncpa [#allocation4 + $0x1], 1 }

</bundles_post_ra>
